<compile_context>
chip_gen: v7x
topology: tpu7x:2x2x1
jax: 0.10.0
libtpu: 0.0.40
codegen_flags: <defaults>
</compile_context>

<pallas_src>
import math
from functools import partial

import jax
import jax.numpy as jnp
from jax.experimental import pallas as pl
from jax.experimental.pallas import tpu as pltpu

EPS = 1e-5
LANE = 128
N_CORES = 2                            # leading "parallel" grid axis (v7x megacore)
VMEM_LIMIT_BYTES = 48 * 1024 * 1024    # > default scoped limit everywhere, < v7x 64 MiB
TILE_BUDGET_BYTES = 20 * 1024 * 1024   # per-tile working-set budget used to pick tile_n


def _round_up(x, m):
    return ((x + m - 1) // m) * m


def _softplus(x):
    # numerically stable softplus (matches torch.nn.Softplus for moderate x)
    return jnp.maximum(x, 0.0) + jnp.log1p(jnp.exp(-jnp.abs(x)))


def _gated_nobias(atom_ref, nbrbond_ref, wc_ref, wnb_ref):
    """fc_full WITHOUT the bias on one N-tile, central-atom block factored out.

    atom_ref    : (T, A)      f32   central atom features
    nbrbond_ref : (T, M, A+B) bf16  fused [neighbour atom | bond] features
    wc_ref      : (A, 2A)     bf16  central-atom rows of fc_full.weight.T
    wnb_ref     : (A+B, 2A)   bf16  neighbour+bond rows of fc_full.weight.T
    Returns (T, M, 2A) float32.
    """
    t, m, k = nbrbond_ref.shape
    c2a = wc_ref.shape[-1]
    # One fused MXU matmul for the big stream (one DMA stream, one MXU
    # push/drain, better K fill); bf16 operands, f32 accumulation.
    nbr_part = jnp.dot(nbrbond_ref[...].reshape(t * m, k), wnb_ref[...],
                       preferred_element_type=jnp.float32)        # (T*M, 2A)
    # Central-atom contribution computed once per atom, broadcast over M.
    central = jnp.dot(atom_ref[...].astype(jnp.bfloat16), wc_ref[...],
                      preferred_element_type=jnp.float32)         # (T, 2A)
    return nbr_part.reshape(t, m, c2a) + central[:, None, :]


def bn1_stats_kernel(atom_ref, nbrbond_ref, wc_ref, wnb_ref,
                     sum1_ref, sumsq1_ref):
    """Pass 1: per-core sum / sum-of-squares of the (bias-less) fc output.

    Bias is excluded: it is a per-feature constant so the variance is
    unchanged and it cancels exactly inside BN1 (training-mode batch stats).
    Zero-padded rows therefore contribute exactly 0 -> no row mask needed.
    """
    gated0 = _gated_nobias(atom_ref, nbrbond_ref, wc_ref, wnb_ref)
    t, m, c = gated0.shape
    g2d = gated0.reshape(t * m, c)

    @pl.when(pl.program_id(1) == 0)
    def _():
        sum1_ref[...] = jnp.zeros_like(sum1_ref)
        sumsq1_ref[...] = jnp.zeros_like(sumsq1_ref)

    sum1_ref[...] += jnp.sum(g2d, axis=0, keepdims=True)[None]
    sumsq1_ref[...] += jnp.sum(g2d * g2d, axis=0, keepdims=True)[None]


def bn1_apply_kernel(atom_ref, nbrbond_ref, wc_ref, wnb_ref,
                     scale1_ref, shift1_ref,
                     summed_ref, sum2_ref, sumsq2_ref,
                     *, tile_n, ntiles_per_core, n_real, need_mask):
    """Pass 2: BN1 (pre-folded affine), gate, neighbour-sum; BN2 stats."""
    gated0 = _gated_nobias(atom_ref, nbrbond_ref, wc_ref, wnb_ref)
    t, m, c = gated0.shape
    a = c // 2

    # BN1 (and the fc bias) folded by the wrapper into one affine transform.
    gated = gated0 * scale1_ref[...][:, None, :] + shift1_ref[...][:, None, :]

    nbr_filter = jax.nn.sigmoid(gated[:, :, :a])
    nbr_core = _softplus(gated[:, :, a:])
    summed = jnp.sum(nbr_filter * nbr_core, axis=1)               # (T, A)

    if need_mask:
        # zero padded rows so they do not pollute the BN2 batch statistics
        row0 = (pl.program_id(0) * ntiles_per_core + pl.program_id(1)) * tile_n
        rows = row0 + jax.lax.broadcasted_iota(jnp.int32, (t, 1), 0)
        summed = summed * (rows < n_real).astype(summed.dtype)

    @pl.when(pl.program_id(1) == 0)
    def _():
        sum2_ref[...] = jnp.zeros_like(sum2_ref)
        sumsq2_ref[...] = jnp.zeros_like(sumsq2_ref)

    sum2_ref[...] += jnp.sum(summed, axis=0, keepdims=True)[None]
    sumsq2_ref[...] += jnp.sum(summed * summed, axis=0, keepdims=True)[None]

    # lane-dense store: pad (T, A) -> (T, out_w) where out_w is a multiple of 128
    pad = summed_ref.shape[-1] - a
    if pad > 0:
        summed = jnp.concatenate([summed, jnp.zeros((t, pad), summed.dtype)], -1)
    summed_ref[...] = summed


def bn2_finalize_kernel(atom_ref, summed_ref, scale2_ref, shift2_ref, out_ref):
    """Pass 3: BN2 + residual + softplus, written lane-dense."""
    t, a = atom_ref.shape
    summed = summed_ref[...][:, :a]
    res = _softplus(atom_ref[...] + summed * scale2_ref[...] + shift2_ref[...])
    pad = out_ref.shape[-1] - a
    if pad > 0:
        res = jnp.concatenate([res, jnp.zeros((t, pad), res.dtype)], -1)
    out_ref[...] = res


def _pick_tile_n(n, m, a, b, n_cores):
    """Largest tile that fits the per-tile (double-buffered) VMEM budget."""
    c2a = 2 * a
    out_w = _round_up(a, LANE)
    cap = max(8, -(-n // n_cores))
    for t in (1024, 512, 256, 128, 64, 32, 16, 8):
        if t > cap:
            continue
        per_tile = (2 * t * (a * 4 + m * (a + b) * 2)      # dbl-buffered inputs
                    + t * m * c2a * 4                       # f32 gated intermediate
                    + 2 * 2 * t * out_w * 4)                # dbl-buffered outputs
        if per_tile <= TILE_BUDGET_BYTES:
            return t
    return 8


def conv_layer_forward(atom_in_fea, nbr_fea, nbr_fea_idx, params, *,
                       tile_n=None, n_cores=N_CORES):
    N, A = atom_in_fea.shape
    _, M, B = nbr_fea.shape
    w, b, g1, be1, g2, be2 = params
    c2a = 2 * A
    out_w = _round_up(A, LANE)

    # fc_full.weight.T split: rows [0:A] act on the central atom, rows [A:]
    # act on the fused [neighbour-atom | bond] features.  bf16 MXU operands.
    wc = w[:A].astype(jnp.bfloat16)             # (A, 2A)
    wnb = w[A:].astype(jnp.bfloat16)            # (A+B, 2A)

    # Plain-JAX glue: gather neighbour atom features and fuse with the bond
    # features into ONE bf16 HBM stream (half the bytes of two f32 streams;
    # it is streamed twice, in pass 1 and pass 2).
    atom_bf = atom_in_fea.astype(jnp.bfloat16)
    atom_nbr = jnp.take(atom_bf, nbr_fea_idx.reshape(-1), axis=0).reshape(N, M, A)
    nbrbond = jnp.concatenate([atom_nbr, nbr_fea.astype(jnp.bfloat16)], axis=-1)
    # TODO(synk): on v5e, move this gather into the kernel (scalar-prefetched
    # nbr_fea_idx + per-row DMA from a VMEM-resident bf16 atom table) so the
    # (N, M, A) gathered intermediate never hits HBM at all.

    if tile_n is None:
        tile_n = _pick_tile_n(N, M, A, B, n_cores)

    # Pad N up to a multiple of n_cores * tile_n (never fall back to tile_n=N,
    # which would disable pipelining and OOM VMEM at realistic N on v7x).
    n_pad = _round_up(N, n_cores * tile_n)
    atom_f = atom_in_fea
    if n_pad != N:
        atom_f = jnp.pad(atom_f, ((0, n_pad - N), (0, 0)))
        nbrbond = jnp.pad(nbrbond, ((0, n_pad - N), (0, 0), (0, 0)))
    ntiles_per_core = n_pad // (n_cores * tile_n)
    grid12 = (n_cores, ntiles_per_core)

    row_spec = pl.BlockSpec((tile_n, A),
                            lambda c, i: (c * ntiles_per_core + i, 0))
    nbrbond_spec = pl.BlockSpec((tile_n, M, A + B),
                                lambda c, i: (c * ntiles_per_core + i, 0, 0))
    summed_spec = pl.BlockSpec((tile_n, out_w),
                               lambda c, i: (c * ntiles_per_core + i, 0))

    def full12(shape):
        return pl.BlockSpec(shape, lambda c, i: (0,) * len(shape))

    def stats_spec(width):
        # per-core resident accumulator block: (1, 1, width); the last two
        # block dims equal the full array dims (layout-legal for any width).
        return pl.BlockSpec((1, 1, width), lambda c, i: (c, 0, 0))

    params12 = pltpu.CompilerParams(
        dimension_semantics=("parallel", "arbitrary"),
        vmem_limit_bytes=VMEM_LIMIT_BYTES)
    params3 = pltpu.CompilerParams(
        dimension_semantics=("parallel",),
        vmem_limit_bytes=VMEM_LIMIT_BYTES)

    # ---- pass 1: BN1 batch statistics (per-core resident accumulators) ----
    sum1, sumsq1 = pl.pallas_call(
        bn1_stats_kernel,
        out_shape=(jax.ShapeDtypeStruct((n_cores, 1, c2a), jnp.float32),
                   jax.ShapeDtypeStruct((n_cores, 1, c2a), jnp.float32)),
        grid=grid12,
        in_specs=[row_spec, nbrbond_spec,
                  full12((A, c2a)), full12((A + B, c2a))],
        out_specs=(stats_spec(c2a), stats_spec(c2a)),
        compiler_params=params12,
    )(atom_f, nbrbond, wc, wnb)

    # Combine per-core partials; fold fc bias + BN1 into one affine map.
    cnt1 = float(N * M)
    m0 = jnp.sum(sum1, axis=0) / cnt1                               # (1, 2A)
    var1 = jnp.maximum(jnp.sum(sumsq1, axis=0) / cnt1 - m0 * m0, 0.0)
    scale1 = g1 * jax.lax.rsqrt(var1 + EPS)                         # (1, 2A)
    shift1 = be1 - m0 * scale1          # fc bias cancels exactly inside BN1

    # ---- pass 2: BN1-apply, gate, neighbour-sum; BN2 statistics ----
    cost2 = pl.CostEstimate(
        flops=2 * n_pad * M * (A + B) * c2a + 2 * n_pad * A * c2a,
        transcendentals=3 * n_pad * M * A,
        bytes_accessed=(n_pad * A * 4 + n_pad * M * (A + B) * 2
                        + n_pad * out_w * 4 + 2 * (2 * A + B) * c2a))
    summed_pad, sum2, sumsq2 = pl.pallas_call(
        partial(bn1_apply_kernel, tile_n=tile_n,
                ntiles_per_core=ntiles_per_core, n_real=N,
                need_mask=(n_pad != N)),
        out_shape=(jax.ShapeDtypeStruct((n_pad, out_w), jnp.float32),
                   jax.ShapeDtypeStruct((n_cores, 1, A), jnp.float32),
                   jax.ShapeDtypeStruct((n_cores, 1, A), jnp.float32)),
        grid=grid12,
        in_specs=[row_spec, nbrbond_spec,
                  full12((A, c2a)), full12((A + B, c2a)),
                  full12((1, c2a)), full12((1, c2a))],
        out_specs=(summed_spec, stats_spec(A), stats_spec(A)),
        compiler_params=params12,
        cost_estimate=cost2,
    )(atom_f, nbrbond, wc, wnb, scale1, shift1)

    cnt2 = float(N)
    m2 = jnp.sum(sum2, axis=0) / cnt2                               # (1, A)
    var2 = jnp.maximum(jnp.sum(sumsq2, axis=0) / cnt2 - m2 * m2, 0.0)
    scale2 = g2 * jax.lax.rsqrt(var2 + EPS)
    shift2 = be2 - m2 * scale2

    # ---- pass 3: BN2 + residual softplus, lane-dense (n_pad, out_w) output ----
    out_pad = pl.pallas_call(
        bn2_finalize_kernel,
        out_shape=jax.ShapeDtypeStruct((n_pad, out_w), jnp.float32),
        grid=(n_pad // tile_n,),
        in_specs=[pl.BlockSpec((tile_n, A), lambda i: (i, 0)),
                  pl.BlockSpec((tile_n, out_w), lambda i: (i, 0)),
                  pl.BlockSpec((1, A), lambda i: (0, 0)),
                  pl.BlockSpec((1, A), lambda i: (0, 0))],
        out_specs=pl.BlockSpec((tile_n, out_w), lambda i: (i, 0)),
        compiler_params=params3,
    )(atom_f, summed_pad, scale2, shift2)

    return out_pad[:N, :A]


def reference_forward(atom_in_fea, nbr_fea, nbr_fea_idx, params,
                      matmul_dtype=jnp.float32):
    """Pure-JAX reference mirroring the torch forward (training-mode BN).

    matmul_dtype=bf16 mirrors the kernel's bf16-operand / f32-accum matmuls
    for a tight check; f32 gives the exact module semantics (loose check).
    """
    w, b, g1, be1, g2, be2 = params
    N, A = atom_in_fea.shape
    atom_nbr = atom_in_fea[nbr_fea_idx.reshape(-1)].reshape(N, -1, A)
    M = atom_nbr.shape[1]
    central = jnp.broadcast_to(atom_in_fea[:, None, :], (N, M, A))
    total = jnp.concatenate([central, atom_nbr, nbr_fea], axis=2)
    gated = jnp.einsum('nmk,kc->nmc', total.astype(matmul_dtype),
                       w.astype(matmul_dtype),
                       preferred_element_type=jnp.float32) + b
    flat = gated.reshape(-1, 2 * A)
    m1, v1 = flat.mean(0), flat.var(0)
    flat = g1[0] * (flat - m1) * jax.lax.rsqrt(v1 + EPS) + be1[0]
    gated = flat.reshape(N, M, 2 * A)
    filt = jax.nn.sigmoid(gated[:, :, :A])
    core = _softplus(gated[:, :, A:])
    summed = jnp.sum(filt * core, axis=1)
    m2, v2 = summed.mean(0), summed.var(0)
    summed = g2[0] * (summed - m2) * jax.lax.rsqrt(v2 + EPS) + be2[0]
    return _softplus(atom_in_fea + summed)


def _make_inputs(key, N, M, A, B):
    k_atom, k_bond, k_idx = jax.random.split(key, 3)
    atom = jax.random.normal(k_atom, (N, A), dtype=jnp.float32)
    bond = jax.random.normal(k_bond, (N, M, B), dtype=jnp.float32)
    idx = jax.random.randint(k_idx, (N, M), 0, N, dtype=jnp.int32)
    return atom, bond, idx


def _make_params(key, A, B):
    k_w, k_b = jax.random.split(key, 2)
    fan_in = 2 * A + B
    bound = 1.0 / math.sqrt(fan_in)
    w = jax.random.uniform(k_w, (fan_in, 2 * A), minval=-bound, maxval=bound,
                           dtype=jnp.float32)               # fc_full.weight.T
    b = jax.random.uniform(k_b, (1, 2 * A), minval=-bound, maxval=bound,
                           dtype=jnp.float32)                # fc_full.bias
    g1 = jnp.ones((1, 2 * A), jnp.float32)                   # bn1.weight
    be1 = jnp.zeros((1, 2 * A), jnp.float32)                 # bn1.bias
    g2 = jnp.ones((1, A), jnp.float32)                       # bn2.weight
    be2 = jnp.zeros((1, A), jnp.float32)                     # bn2.bias
    return (w, b, g1, be1, g2, be2)


def _check(atom, bond, idx, params, out):
    ref_bf16 = reference_forward(atom, bond, idx, params,
                                 matmul_dtype=jnp.bfloat16)
    assert jnp.allclose(out, ref_bf16, rtol=1e-3, atol=1e-3), \
        "mismatch vs bf16-matmul JAX reference"
    ref_f32 = reference_forward(atom, bond, idx, params,
                                matmul_dtype=jnp.float32)
    assert jnp.allclose(out, ref_f32, rtol=1e-1, atol=1e-1), \
        "mismatch vs f32 JAX reference beyond bf16 tolerance"


if __name__ == "__main__":
    # small, module-consistent shapes
    N, M, A, B = 32, 8, 16, 8      # atoms, max-neighbors, atom_fea_len, nbr_fea_len

    key = jax.random.PRNGKey(0)
    k_in, k_par, k_in2 = jax.random.split(key, 3)
    atom_in_fea, nbr_fea, nbr_fea_idx = _make_inputs(k_in, N, M, A, B)
    params = _make_params(k_par, A, B)

    # tile_n=8 with n_cores=2 -> grid (2, 2): exercises both the per-core
    # partial-stats axis and the cross-tile accumulation axis (no padding).
    out = conv_layer_forward(atom_in_fea, nbr_fea, nbr_fea_idx, params, tile_n=8)
    out = jax.block_until_ready(out)
    assert out.shape == (N, A)
    _check(atom_in_fea, nbr_fea, nbr_fea_idx, params, out)

    # Second run with N not a multiple of the tile: exercises N-padding and
    # the masked BN2-stats path, plus the automatic tile_n selection.
    N2 = 36
    atom2, bond2, idx2 = _make_inputs(k_in2, N2, M, A, B)
    out2 = conv_layer_forward(atom2, bond2, idx2, params)
    out2 = jax.block_until_ready(out2)
    assert out2.shape == (N2, A)
    _check(atom2, bond2, idx2, params, out2)

    print("KERNEL_OK")
</pallas_src>

<mosaic_0001>
module attributes {stable_mosaic.version = 11 : i64} {
  func.func @bn1_stats_kernel(%arg0: i32, %arg1: i32, %arg2: memref<8x16xf32, #tpu.memory_space<vmem>>, %arg3: memref<8x8x24xbf16, #tpu.memory_space<vmem>>, %arg4: memref<16x32xbf16, #tpu.memory_space<vmem>>, %arg5: memref<24x32xbf16, #tpu.memory_space<vmem>>, %arg6: memref<1x1x32xf32, #tpu.memory_space<vmem>>, %arg7: memref<1x1x32xf32, #tpu.memory_space<vmem>>) attributes {dimension_semantics = [#tpu.dimension_semantics<parallel>, #tpu.dimension_semantics<arbitrary>], iteration_bounds = array<i64: 2, 2>, scalar_prefetch = 0 : i64, scratch_operands = 0 : i64, tpu.core_type = #tpu.core_type<tc>, window_params = [{transform_indices = @transform_0, window_bounds = array<i64: 8, 16>}, {transform_indices = @transform_1, window_bounds = array<i64: 8, 8, 24>}, {pipeline_mode = #tpu.pipeline_mode<synchronous>, transform_indices = @transform_2, window_bounds = array<i64: 16, 32>}, {pipeline_mode = #tpu.pipeline_mode<synchronous>, transform_indices = @transform_3, window_bounds = array<i64: 24, 32>}, {transform_indices = @transform_4, window_bounds = array<i64: 1, 1, 32>}, {transform_indices = @transform_5, window_bounds = array<i64: 1, 1, 32>}]} {
    %c0 = arith.constant 0 : index
    %c0_0 = arith.constant 0 : index
    %c0_1 = arith.constant 0 : index
    %0 = vector.load %arg3[%c0, %c0_0, %c0_1] : memref<8x8x24xbf16, #tpu.memory_space<vmem>>, vector<8x8x24xbf16>
    %1 = vector.shape_cast %0 : vector<8x8x24xbf16> to vector<64x24xbf16>
    %c0_2 = arith.constant 0 : index
    %c0_3 = arith.constant 0 : index
    %2 = vector.load %arg5[%c0_2, %c0_3] : memref<24x32xbf16, #tpu.memory_space<vmem>>, vector<24x32xbf16>
    %cst = arith.constant dense<0.000000e+00> : vector<64x32xf32>
    %3 = tpu.matmul %1, %2, %cst {dimension_numbers = #tpu.dot_dimension_numbers<[1], [0], [0], [1], [0, 0, 1, 1], [], []>} : vector<64x24xbf16>, vector<24x32xbf16>, vector<64x32xf32> -> vector<64x32xf32>
    %c0_4 = arith.constant 0 : index
    %c0_5 = arith.constant 0 : index
    %4 = vector.load %arg2[%c0_4, %c0_5] : memref<8x16xf32, #tpu.memory_space<vmem>>, vector<8x16xf32>
    %5 = arith.truncf %4 : vector<8x16xf32> to vector<8x16xbf16>
    %c0_6 = arith.constant 0 : index
    %c0_7 = arith.constant 0 : index
    %6 = vector.load %arg4[%c0_6, %c0_7] : memref<16x32xbf16, #tpu.memory_space<vmem>>, vector<16x32xbf16>
    %cst_8 = arith.constant dense<0.000000e+00> : vector<8x32xf32>
    %7 = tpu.matmul %5, %6, %cst_8 {dimension_numbers = #tpu.dot_dimension_numbers<[1], [0], [0], [1], [0, 0, 1, 1], [], []>} : vector<8x16xbf16>, vector<16x32xbf16>, vector<8x32xf32> -> vector<8x32xf32>
    %8 = vector.shape_cast %3 : vector<64x32xf32> to vector<8x8x32xf32>
    %9 = vector.shape_cast %7 : vector<8x32xf32> to vector<8x1x32xf32>
    %10 = vector.broadcast %9 : vector<8x1x32xf32> to vector<8x8x32xf32>
    %11 = arith.addf %8, %10 : vector<8x8x32xf32>
    %12 = vector.shape_cast %11 : vector<8x8x32xf32> to vector<64x32xf32>
    %c0_i32 = arith.constant 0 : i32
    %13 = arith.cmpi eq, %arg1, %c0_i32 : i32
    %14 = arith.extui %13 : i1 to i32
    %c0_i32_9 = arith.constant 0 : i32
    %15 = arith.cmpi ne, %14, %c0_i32_9 : i32
    scf.if %15 {
      %cst_24 = arith.constant 0.000000e+00 : f32
      %29 = vector.broadcast %cst_24 : f32 to vector<1x1x32xf32>
      %c0_25 = arith.constant 0 : index
      %c0_26 = arith.constant 0 : index
      %c0_27 = arith.constant 0 : index
      %30 = vector.load %arg6[%c0_25, %c0_26, %c0_27] : memref<1x1x32xf32, #tpu.memory_space<vmem>>, vector<1x1x32xf32>
      tpu.vector_store %arg6[%c0_25, %c0_26, %c0_27], %29 {strides = array<i32>} : memref<1x1x32xf32, #tpu.memory_space<vmem>>, vector<1x1x32xf32>,
      %cst_28 = arith.constant 0.000000e+00 : f32
      %31 = vector.broadcast %cst_28 : f32 to vector<1x1x32xf32>
      %c0_29 = arith.constant 0 : index
      %c0_30 = arith.constant 0 : index
      %c0_31 = arith.constant 0 : index
      %32 = vector.load %arg7[%c0_29, %c0_30, %c0_31] : memref<1x1x32xf32, #tpu.memory_space<vmem>>, vector<1x1x32xf32>
      tpu.vector_store %arg7[%c0_29, %c0_30, %c0_31], %31 {strides = array<i32>} : memref<1x1x32xf32, #tpu.memory_space<vmem>>, vector<1x1x32xf32>,
    } else {
    }
    %c0_10 = arith.constant 0 : index
    %c0_11 = arith.constant 0 : index
    %c0_12 = arith.constant 0 : index
    %16 = vector.load %arg6[%c0_10, %c0_11, %c0_12] : memref<1x1x32xf32, #tpu.memory_space<vmem>>, vector<1x1x32xf32>
    %cst_13 = arith.constant dense<0.000000e+00> : vector<32xf32>
    %17 = vector.multi_reduction <add>, %12, %cst_13 [0] : vector<64x32xf32> to vector<32xf32>
    %18 = vector.shape_cast %17 : vector<32xf32> to vector<1x32xf32>
    %19 = vector.shape_cast %18 : vector<1x32xf32> to vector<1x1x32xf32>
    %20 = arith.addf %16, %19 : vector<1x1x32xf32>
    %c0_14 = arith.constant 0 : index
    %c0_15 = arith.constant 0 : index
    %c0_16 = arith.constant 0 : index
    %21 = vector.load %arg6[%c0_14, %c0_15, %c0_16] : memref<1x1x32xf32, #tpu.memory_space<vmem>>, vector<1x1x32xf32>
    tpu.vector_store %arg6[%c0_14, %c0_15, %c0_16], %20 {strides = array<i32>} : memref<1x1x32xf32, #tpu.memory_space<vmem>>, vector<1x1x32xf32>,
    %c0_17 = arith.constant 0 : index
    %c0_18 = arith.constant 0 : index
    %c0_19 = arith.constant 0 : index
    %22 = vector.load %arg7[%c0_17, %c0_18, %c0_19] : memref<1x1x32xf32, #tpu.memory_space<vmem>>, vector<1x1x32xf32>
    %23 = arith.mulf %12, %12 : vector<64x32xf32>
    %cst_20 = arith.constant dense<0.000000e+00> : vector<32xf32>
    %24 = vector.multi_reduction <add>, %23, %cst_20 [0] : vector<64x32xf32> to vector<32xf32>
    %25 = vector.shape_cast %24 : vector<32xf32> to vector<1x32xf32>
    %26 = vector.shape_cast %25 : vector<1x32xf32> to vector<1x1x32xf32>
    %27 = arith.addf %22, %26 : vector<1x1x32xf32>
    %c0_21 = arith.constant 0 : index
    %c0_22 = arith.constant 0 : index
    %c0_23 = arith.constant 0 : index
    %28 = vector.load %arg7[%c0_21, %c0_22, %c0_23] : memref<1x1x32xf32, #tpu.memory_space<vmem>>, vector<1x1x32xf32>
    tpu.vector_store %arg7[%c0_21, %c0_22, %c0_23], %27 {strides = array<i32>} : memref<1x1x32xf32, #tpu.memory_space<vmem>>, vector<1x1x32xf32>,
    return
  }
  func.func @transform_0(%arg0: i32, %arg1: i32) -> (i32, i32) {
    %c2_i32 = arith.constant 2 : i32
    %0 = arith.muli %arg0, %c2_i32 : i32
    %1 = arith.addi %0, %arg1 : i32
    %c0_i32 = arith.constant 0 : i32
    %c0_i32_0 = arith.constant 0 : i32
    return %1, %c0_i32 : i32, i32
  }
  func.func @transform_1(%arg0: i32, %arg1: i32) -> (i32, i32, i32) {
    %c2_i32 = arith.constant 2 : i32
    %0 = arith.muli %arg0, %c2_i32 : i32
    %1 = arith.addi %0, %arg1 : i32
    %c0_i32 = arith.constant 0 : i32
    %c0_i32_0 = arith.constant 0 : i32
    %c0_i32_1 = arith.constant 0 : i32
    return %1, %c0_i32, %c0_i32_0 : i32, i32, i32
  }
  func.func @transform_2(%arg0: i32, %arg1: i32) -> (i32, i32) {
    %c0_i32 = arith.constant 0 : i32
    %c0_i32_0 = arith.constant 0 : i32
    %c0_i32_1 = arith.constant 0 : i32
    return %c0_i32, %c0_i32_0 : i32, i32
  }
  func.func @transform_3(%arg0: i32, %arg1: i32) -> (i32, i32) {
    %c0_i32 = arith.constant 0 : i32
    %c0_i32_0 = arith.constant 0 : i32
    %c0_i32_1 = arith.constant 0 : i32
    return %c0_i32, %c0_i32_0 : i32, i32
  }
  func.func @transform_4(%arg0: i32, %arg1: i32) -> (i32, i32, i32) {
    %c0_i32 = arith.constant 0 : i32
    %c0_i32_0 = arith.constant 0 : i32
    %c0_i32_1 = arith.constant 0 : i32
    return %arg0, %c0_i32, %c0_i32_0 : i32, i32, i32
  }
  func.func @transform_5(%arg0: i32, %arg1: i32) -> (i32, i32, i32) {
    %c0_i32 = arith.constant 0 : i32
    %c0_i32_0 = arith.constant 0 : i32
    %c0_i32_1 = arith.constant 0 : i32
    return %arg0, %c0_i32, %c0_i32_0 : i32, i32, i32
  }
}

</mosaic_0001>

<bundles_post_ra>
// kernel: tpu_custom_call.1
= control target key start
LH: loop header
LB: loop body
LE: loop exit
PB: predicated region body
PF: predicated region fallthrough
CT: control target
= control target key end

     0   :  { %11 = vsyncpa [#allocation3], 0  ;;  %s1291_s0 = inlined_call_operand.vmem [shape: f32[32,16], index: 0, kind: input, shape index: {}]   ;;  %s1292_s1 = inlined_call_operand.vmem [shape: bf16[32,8,24], index: 1, kind: input, shape index: {}]   ;;  %s1293_s2 = inlined_call_operand.vmem [shape: bf16[16,32], index: 2, kind: input, shape index: {}]   ;;  %s1294_s3 = inlined_call_operand.vmem [shape: bf16[24,32], index: 3, kind: input, shape index: {}]   ;;  %s1295_s4 = inlined_call_operand.hbm [shape: f32[2,1,32], index: 4, kind: output, shape index: {0}]   ;;  %s1296_s5 = inlined_call_operand.hbm [shape: f32[2,1,32], index: 5, kind: output, shape index: {1}]  }
   0x1   :  { %13 = vsyncpa [#allocation3 + $0x1], 0 }
   0x2   :  { %14 = vsyncpa [#allocation5], 0 }
   0x3   :  { %16 = vsyncpa [#allocation5 + $0x1], 0  ;;  %s1076_s18 = smov 0   ;;  %s1078_s19 = smov 0  }
   0x4   :  { %s1080_s20 = smov 0   ;;  %s1082_s21 = smov 0  }
   0x5   :  { %s1084_s22 = smov 0   ;;  %s1086_s23 = smov 0  }
   0x6   :  { %s1088_s24 = smov 0   ;;  %s1090_s25 = smov 0  }
   0x7 LB: > { %s767_s26 = sadd.s32 4294967295, %s1038_s25   ;;  %s768_s27 = sadd.s32 4294967294, %s1038_s25   ;;  %s1038_s25 = sphi %s1090_s25, %s22_s25   ;;  %s1034_s24 = sphi %s1088_s24, %s1308_s24   ;;  %s1030_s23 = sphi %s1086_s23, %s1307_s23   ;;  %s1026_s22 = sphi %s1084_s22, %s1306_s22   ;;  %s1022_s21 = sphi %s1082_s21, %s1305_s21   ;;  %s1018_s20 = sphi %s1080_s20, %s1304_s20   ;;  %s1014_s19 = sphi %s1078_s19, %s1303_s19   ;;  %s1010_s18 = sphi %s1076_s18, %s1302_s18  }
   0x8   : > { %s31_s28 = sadd.s32 1, %s1030_s23  ;;  %s34_s29 = sadd.s32 1, %s1034_s24 }
   0x9   : > { %p32_p0 = scmp.ge.s32.totalorder %s31_s28, 2  ;;  %p153_p1 = scmp.ne.s32.totalorder %s1018_s20, %s1014_s19 }
   0xa   : > { %p154_p2 = scmp.eq.s32.totalorder %s767_s26, 3  ;;  %p159_p4 = scmp.ne.s32.totalorder %s1014_s19, %s1010_s18 }
   0xb   : > { %s1310_s28 = smov (%p32_p0, %s31_s28), 0  ;;  %s1312_s29 = smov (!%p32_p0, %s34_s29), %s1034_s24 }
   0xc   : > { %p1125_p3 = por %p154_p2, %p153_p1  ;;  %p36_p5 = scmp.ge.s32.totalorder %s1312_s29, 2 }
   0xd   : > { %p160_p6 = scmp.eq.s32.totalorder %s768_s27, 3  ;;  %p775_p7 = scmp.ge.s32.totalorder %s1038_s25, 1 }
   0xe   : > { %p234_p8 = scmp.lt.s32.totalorder %s1038_s25, 5  ;;  %s1314_s29 = smov (%p36_p5, %s1312_s29), 0 }
   0xf   : > { %p1135_p9 = por %p160_p6, %p159_p4  ;;  %s140_s7 = ssub.s32 %s1034_s24, %s1314_s29 }
  0x10   : > { %p235_p10 = pnand %p775_p7, %p234_p8  ;;  %s143_s8 = sadd.s32 1, %s1018_s20 }
  0x11   : > { %p141_p11 = scmp.eq.s32.totalorder %s140_s7, 0  ;;  %s1146_s10 = sand.u32 (!%p235_p10), 1, %s1014_s19   ;;  %v905_v0 = vld [vmem:[%s1294_s3] sm:$0xff] (!%p235_p10)   ;;  %v1040_v2 = vmov (!%p235_p10), 0.0   ;;  %v907_v3 = vld [vmem:[%s1294_s3 + $0x8] ss:$0 sps:$4 sm:$0xff] (!%p235_p10)   ;;  %v473_v13 = vlaneseq (!%p235_p10) }
  0x12   : > { %238 = sbr.rel (%p235_p10) target bundleno = 325 (0x145), region = 36  ;;  %v906_v1 = vld [vmem:[%s1293_s2] sm:$0xff] (!%p235_p10)   ;;  %806 = vmatprep.subr.bf16.mxu0 (!%p235_p10), %v905_v0  ;;  %818 = vmatprep.subr.bf16.mxu1 (!%p235_p10), %v1040_v2  ;;  %vm345_vm0 = vcmask (!%p235_p10), 1043456   ;;  %s776_s17 = sshll.u32 (!%p235_p10), %s1026_s22, 1  ;;  %vm1041_vm1 = vmmov (!%p235_p10), 0   ;;  %vm424_vm2 = vcmask (!%p235_p10), 130048  }
  0x13   : > { %s1143_s9 = scalar_select %p141_p11, %s1018_s20, %s143_s8  }
  0x14   : > { %807 = vmatpush3.bf16.msra.mxu0 (!%p235_p10), %v905_v0  ;;  %819 = vmatpush3.bf16.msra.mxu1 (!%p235_p10), %v906_v1  ;;  %v347_v4 = vsel (!%p235_p10), %vm345_vm0, %v907_v3, 0  ;;  %s274_s26 = sadd.s32 (!%p235_p10), %s1022_s21, %s776_s17  ;;  %vm332_vm3 = vcmask (!%p235_p10), 195584   ;;  %v1042_v11 = vmov (!%p235_p10), 1966171168   ;;  %v474_v15 = vshrl.u32 (!%p235_p10), %v473_v13, 7  ;;  %s1166_s17 = scalar_lea.vmem (!%p235_p10), [#allocation2], %s1146_s10 }
  0x15   : > { %824 = vmatprep.subr.msk.bf16.mxu0 (!%p235_p10), %vm345_vm0, %v907_v3  ;;  %820 = vmatprep.mubr.msk.bf16.mxu1 (!%p235_p10), %vm1041_vm1, %v1040_v2  ;;  %p275_p12 = scmp.lt.s32.totalorder (!%p235_p10), %s274_s26, 3  ;;  %s779_s27 = sshll.u32 (!%p235_p10), %s274_s26, 3  ;;  %v471_v12 = vunpack.c.l.s4 (!%p235_p10), %v1042_v11 }
  0x16   : > { %p284_p13 = scmp.lt.s32.totalorder (!%p235_p10), %s779_s27, 31  ;;  %v520_v22 = vsub.s32 (!%p235_p10), 0, %v474_v15  ;;  %p793_p0 = scmp.ne.s32.totalorder (!%p235_p10), %s1022_s21, 0 }
  0x17   : > { %v472_v14 = vunpack.c.0.s8 (!%p235_p10), %v471_v12 }
  0x18   : > { %809 = vmatpush3.bf16.msra.mxu0 (!%p235_p10), %v347_v4 }
  0x19   : > { %s1316_s26 = smov (!%p275_p12, %s274_s26), 3  ;;  %s1318_s27 = smov (!%p284_p13, %s779_s27), 31  ;;  %v475_v16 = vsub.s32 %v472_v14, %v474_v15 }
  0x1a   : > { %s777_s7 = sshll.u32 %s1316_s26, 3  ;;  %s780_s13 = sshll.u32 %s1318_s27, 2  ;;  %vm570_vm4 = vcmask (!%p793_p0), 253952   ;;  %v1043_v59 = vmov (!%p793_p0), 0.0  }
  0x1b   : > { %s278_s12 = scalar_lea.vmem %s1291_s0, %s777_s7  ;;  %s287_s16 = scalar_lea.vmem %s1292_s1, %s780_s13  ;;  %571 = vst.msk [vmem:[%s1166_s17] sm:$0x1] (!%p793_p0), %vm570_vm4, %v1043_v59 }
  0x1c   : > { %v414_v5 = vld [vmem:[%s278_s12] sm:$0xff]  ;;  %v909_v8 = vld [vmem:[%s287_s16 + $0x8] sm:$0xff]   ;;  %v910_v9 = vld [vmem:[%s287_s16 + $0x10] sm:$0xff]   ;;  %s1169_s26 = scalar_lea.vmem [#allocation4], %s1146_s10 }
  0x1d   : > { %v415_v6 = vpack.c.bf16 %v414_v5, %v414_v5  ;;  %v908_v7 = vld [vmem:[%s287_s16] sm:$0xff]   ;;  %v911_v10 = vld [vmem:[%s287_s16 + $0x18] sm:$0xff]   ;;  %572 = vst.msk [vmem:[%s1169_s26] sm:$0x1] (!%p793_p0), %vm570_vm4, %v1043_v59 }
  0x1e   : > { %810 = vmatprep.mubr.msk.bf16.mxu0 %vm332_vm3, %v908_v7 }
  0x1f   : > { %821 = vmatmul.mubr.msk.bf16.vlgmr.msra.gmra.mrb[0].mxu1 %vm424_vm2, %v415_v6  ;;  %811 = vmatmul.mubr.msk.bf16.vlgmr.msra.gmra.mrb[0].mxu0 %vm332_vm3, %v909_v8 }
  0x20   : > { %814 = vmatprep.mubr.msk.bf16.mxu0 %vm332_vm3, %v910_v9 }
  0x27   : > { %815 = vmatmul.mubr.msk.bf16.gmra.mrb[4].mxu0 %vm332_vm3, %v911_v10 }
  0xf2   : > { %v462_v17 = vpop.f32.mrb[0].mxu1  ;;  %v812_v21 = vpop.f32.mrb[0].mxu0 }
  0xf3   : > { %v469_v18 = vcombine.high %v462_v17, %v462_v17  ;;  %v476_v19 = vrot.slane %v462_v17, %v475_v16  ;;  %v822_v20 = vpop.f32.mrb[1].mxu1  ;;  %v383_v24 = vpop.f32.mrb[1].mxu0 }
  0xf4   : > { %v465_v23 = vpop.f32.mrb[2].mxu1  ;;  %v813_v29 = vpop.f32.mrb[2].mxu0 }
  0xf5   : > { %v483_v25 = vrot.slane %v469_v18, %v475_v16  ;;  %v484_v26 = vcombine.high %v476_v19, %v476_v19  ;;  %v492_v27 = vrot.slane %v476_v19, %v475_v16  ;;  %v823_v28 = vpop.f32.mrb[3].mxu1  ;;  %v386_v30 = vpop.f32.mrb[3].mxu0 }
  0xf7   : > { %v485_v31 = vcombine.high %v483_v25, %v483_v25  ;;  %v499_v32 = vrot.slane %v483_v25, %v475_v16  ;;  %v506_v33 = vrot.slane %v484_v26, %v475_v16  ;;  %v514_v34 = vcombine.high %v492_v27, %v492_v27 }
  0xf8   : > { %v521_v35 = vrot.slane %v492_v27, %v520_v22 }
  0xf9   : > { %v529_v36 = vrot.slane %v514_v34, %v520_v22  ;;  %v516_v37 = vcombine.high %v506_v33, %v506_v33  ;;  %v525_v38 = vrot.slane %v506_v33, %v520_v22  ;;  %v515_v39 = vcombine.high %v499_v32, %v499_v32 }
  0xfa   : > { %v558_v40 = vadd.f32 %v521_v35, %v383_v24  ;;  %v537_v41 = vrot.slane %v499_v32, %v520_v22  ;;  %v513_v42 = vrot.slane %v485_v31, %v475_v16  ;;  %v816_v46 = vpop.f32.mrb[4].mxu0  ;;  %569 = sbr.rel (%p793_p0) target bundleno = 257 (0x101), region = 40 }
  0xfb   : > { %v560_v43 = vadd.f32 %v812_v21, %v529_v36  ;;  %v533_v44 = vrot.slane %v516_v37, %v520_v22  ;;  %v559_v45 = vadd.f32 %v525_v38, %v386_v30  ;;  %v545_v47 = vrot.slane %v515_v39, %v520_v22  ;;  %v399_v48 = vpop.f32.mrb[5].mxu0 }
  0xfc   : > { %v517_v49 = vcombine.high %v513_v42, %v513_v42  ;;  %v562_v52 = vadd.f32 %v537_v41, %v399_v48  ;;  %v817_v53 = vpop.f32.mrb[6].mxu0  ;;  %v541_v54 = vrot.slane %v513_v42, %v520_v22 }
  0xfd   : > { %v561_v50 = vadd.f32 %v813_v29, %v533_v44  ;;  %v564_v51 = vadd.f32 %v816_v46, %v545_v47  ;;  %v402_v56 = vpop.f32.mrb[7].mxu0 }
  0xfe   : > { %v549_v55 = vrot.slane %v517_v49, %v520_v22  ;;  %v563_v57 = vadd.f32 %v541_v54, %v402_v56 }
 0x100   : > { %v565_v58 = vadd.f32 %v817_v53, %v549_v55 }
 0x101 PF: > { %vm574_vm5 = vcmask 261120   ;;  %v600_v60 = vmul.f32 %v558_v40, %v558_v40  ;;  %v601_v0 = vmul.f32 %v559_v45, %v559_v45  ;;  %v602_v3 = vmul.f32 %v560_v43, %v560_v43  ;;  %v573_v42 = vld [vmem:[%s1166_s17] sm:$0x1]  ;;  %s1297_s21 = sshll.u32 %s1026_s22, 4  ;;  %s648_s27 = sshll.u32 %s1166_s17, 4  ;;  %s1200_s27 = int_to_ptr.vmem [resolvable:$true] %s648_s27 }
 0x102   : > { %v575_v61 = vsel %vm574_vm5, %v558_v40, 0.0  ;;  %v576_v62 = vsel %vm574_vm5, %v559_v45, 0.0  ;;  %v578_v63 = vsel %vm574_vm5, %v560_v43, 0.0  ;;  %v580_v2 = vsel %vm574_vm5, %v561_v50, 0.0  ;;  %s1198_s11 = scalar_lea.hbm %s1295_s4, %s1297_s21  ;;  %v599_v47 = vld [vmem:[%s1169_s26] sm:$0x1] }
 0x103   : > { %v577_v1 = vadd.f32 %v576_v62, %v575_v61  ;;  %v603_v4 = vmul.f32 %v561_v50, %v561_v50  ;;  %v582_v6 = vsel %vm574_vm5, %v562_v52, 0.0  ;;  %v604_v7 = vmul.f32 %v562_v52, %v562_v52  ;;  %s632_s13 = scalar_lea.sflag [#allocation3], %s1146_s10  ;;  %s912_s14 = scalar_lea.vmem %s1200_s27, 16 }
 0x104   : > { %v608_v8 = vsel %vm574_vm5, %v600_v60, 0.0  ;;  %v609_v9 = vsel %vm574_vm5, %v601_v0, 0.0  ;;  %v611_v10 = vsel %vm574_vm5, %v602_v3, 0.0  ;;  %v584_v13 = vsel %vm574_vm5, %v563_v57, 0.0  ;;  %p913_p1 = scmp.ne.s32.totalorder %s1200_s27, %s912_s14  ;;  %s1044_s15 = smov [#allocation2]  }
 0x105   : > { %v579_v5 = vadd.f32 %v578_v63, %v577_v1  ;;  %v610_v12 = vadd.f32 %v609_v9, %v608_v8  ;;  %v605_v14 = vmul.f32 %v563_v57, %v563_v57  ;;  %v613_v15 = vsel %vm574_vm5, %v603_v4, 0.0  ;;  %s916_s16 = sshll.u32 %s1044_s15, 4  ;;  %s917_s16 = int_to_ptr.vmem [resolvable:$false] %s916_s16 }
 0x106   : > { %v586_v18 = vsel %vm574_vm5, %v564_v51, 0.0  ;;  %v606_v19 = vmul.f32 %v564_v51, %v564_v51  ;;  %v615_v20 = vsel %vm574_vm5, %v604_v7, 0.0  ;;  %v588_v23 = vsel %vm574_vm5, %v565_v58, 0.0  ;;  %p914_p2 = pnand %p913_p1, %p1125_p3  ;;  %s918_s7 = scalar_lea.vmem %s917_s16, 32 }
 0x107   : > { %v581_v11 = vadd.f32 %v580_v2, %v579_v5  ;;  %v612_v17 = vadd.f32 %v611_v10, %v610_v12  ;;  %v607_v24 = vmul.f32 %v565_v58, %v565_v58  ;;  %v617_v25 = vsel %vm574_vm5, %v605_v14, 0.0  ;;  %p919_p5 = scmp.lt.s32.totalorder %s1200_s27, %s917_s16  ;;  %p920_p6 = scmp.lt.s32.totalorder %s918_s7, %s912_s14 }
 0x108   : > { %v619_v28 = vsel %vm574_vm5, %v606_v19, 0.0  ;;  %vm597_vm6 = vcmask 253952   ;;  %p915_p4 = pneg %p914_p2 }
 0x109   : > { %v583_v16 = vadd.f32 %v582_v6, %v581_v11  ;;  %v614_v22 = vadd.f32 %v613_v15, %v612_v17  ;;  %v621_v31 = vsel %vm574_vm5, %v607_v24, 0.0  ;;  %p921_p7 = por %p920_p6, %p919_p5 }
 0x10b   : > { %v585_v21 = vadd.f32 %v584_v13, %v583_v16  ;;  %v616_v27 = vadd.f32 %v615_v20, %v614_v22  ;;  %p922_p8 = pnand %p921_p7, %p915_p4 }
 0x10d   : > { %v587_v26 = vadd.f32 %v586_v18, %v585_v21  ;;  %v618_v30 = vadd.f32 %v617_v25, %v616_v27 }
 0x10f   : > { %v589_v29 = vadd.f32 %v588_v23, %v587_v26  ;;  %v620_v33 = vadd.f32 %v619_v28, %v618_v30 }
 0x111   : > { %v590_v32 = vrot.slane %v589_v29, 4  ;;  %v622_v35 = vadd.f32 %v621_v31, %v620_v33 }
 0x113   : > { %v591_v34 = vadd.f32 %v590_v32, %v589_v29  ;;  %v623_v37 = vrot.slane %v622_v35, 4 }
 0x115   : > { %v592_v36 = vrot.slane %v591_v34, 2  ;;  %v624_v39 = vadd.f32 %v623_v37, %v622_v35 }
 0x117   : > { %v593_v38 = vadd.f32 %v592_v36, %v591_v34  ;;  %v625_v41 = vrot.slane %v624_v39, 2 }
 0x119   : > { %v594_v40 = vrot.slane %v593_v38, 1  ;;  %v626_v44 = vadd.f32 %v625_v41, %v624_v39 }
 0x11b   : > { %v595_v43 = vadd.f32 %v594_v40, %v593_v38  ;;  %v627_v46 = vrot.slane %v626_v44, 1 }
 0x11d   : > { %v596_v45 = vadd.f32 %v595_v43, %v573_v42  ;;  %v628_v48 = vadd.f32 %v627_v46, %v626_v44 }
 0x11f   : > { %598 = vst.msk [vmem:[%s1166_s17] sm:$0x1] %vm597_vm6, %v596_v45 }
 0x120   : > { %925 = shalt.err (!%p922_p8)
}
 0x121   : > { %s926_s17 = scalar_lea.hbm %s1198_s11, 16  ;;  %s930_s15 = scalar_lea.hbm %s1295_s4, 32 }
 0x122   : > { %p927_p10 = scmp.ne.s32.totalorder %s1198_s11, %s926_s17  ;;  %p931_p13 = scmp.lt.u32.totalorder %s1198_s11, %s1295_s4 }
 0x123   : > { %p932_p0 = scmp.lt.u32.totalorder %s930_s15, %s926_s17  ;;  %p934_p2 = scmp.lt.u32.totalorder %s926_s17, %s1198_s11 }
 0x124   : > { %p928_p11 = pnand %p927_p10, %p1125_p3 }
 0x125   : > { %p933_p1 = por %p932_p0, %p931_p13 }
 0x126   : > { %p929_p12 = pneg %p928_p11 }
 0x127   : > { %p935_p4 = por %p934_p2, %p933_p1 }
 0x129   : > { %p936_p5 = pnand %p935_p4, %p929_p12 }
 0x12b   : > { %939 = shalt.err (!%p936_p5)
}
 0x12c   : > { %825 = dma.vmem_to_hbm [thread:$0]  (%p1125_p3), %s1200_s27, 16, %s1198_s11, %s632_s13   ;;  %v629_v49 = vadd.f32 %v628_v48, %v599_v47 }
 0x12d   : > { %s1300_s12 = sshll.u32 %s1026_s22, 4  ;;  %s1301_s17 = sshll.u32 %s1169_s26, 4  ;;  %s1237_s17 = int_to_ptr.vmem [resolvable:$true] %s1301_s17 }
 0x12e   : > { %s1233_s7 = scalar_lea.hbm %s1296_s5, %s1300_s12  ;;  %630 = vst.msk [vmem:[%s1169_s26] sm:$0x1] %vm597_vm6, %v629_v49  ;;  %s636_s8 = scalar_lea.sflag [#allocation5], %s1146_s10 }
 0x12f   : > { %s940_s15 = scalar_lea.vmem %s1237_s17, 16  ;;  %s1045_s22 = smov [#allocation4]  }
 0x130   : > { %p941_p6 = scmp.ne.s32.totalorder %s1237_s17, %s940_s15  ;;  %s944_s27 = sshll.u32 %s1045_s22, 4  ;;  %s945_s27 = int_to_ptr.vmem [resolvable:$false] %s944_s27 }
 0x131   : > { %s946_s11 = scalar_lea.vmem %s945_s27, 32  ;;  %p947_p10 = scmp.lt.s32.totalorder %s1237_s17, %s945_s27 }
 0x132   : > { %p942_p7 = pnand %p941_p6, %p1125_p3  ;;  %p948_p11 = scmp.lt.s32.totalorder %s946_s11, %s940_s15 }
 0x134   : > { %p943_p8 = pneg %p942_p7  ;;  %p949_p12 = por %p948_p11, %p947_p10 }
 0x136   : > { %p950_p13 = pnand %p949_p12, %p943_p8 }
 0x138   : > { %953 = shalt.err (!%p950_p13)
}
 0x139   : > { %s954_s10 = scalar_lea.hbm %s1233_s7, 16  ;;  %s958_s16 = scalar_lea.hbm %s1296_s5, 32 }
 0x13a   : > { %p955_p0 = scmp.ne.s32.totalorder %s1233_s7, %s954_s10  ;;  %p959_p4 = scmp.lt.u32.totalorder %s1233_s7, %s1296_s5 }
 0x13b   : > { %p960_p5 = scmp.lt.u32.totalorder %s958_s16, %s954_s10  ;;  %p962_p7 = scmp.lt.u32.totalorder %s954_s10, %s1233_s7 }
 0x13c   : > { %p956_p1 = pnand %p955_p0, %p1125_p3 }
 0x13d   : > { %p961_p6 = por %p960_p5, %p959_p4 }
 0x13e   : > { %p957_p2 = pneg %p956_p1 }
 0x13f   : > { %p963_p8 = por %p962_p7, %p961_p6 }
 0x141   : > { %p964_p10 = pnand %p963_p8, %p957_p2 }
 0x143   : > { %967 = shalt.err (!%p964_p10)
}
 0x144   : > { %826 = dma.vmem_to_hbm [thread:$0]  (%p1125_p3), %s1237_s17, 16, %s1233_s7, %s636_s8  }
 0x145 PF: > { %p836_p11 = scmp.ge.s32.totalorder %s1038_s25, 2  ;;  %s673_s14 = sand.u32 1, %s1010_s18  }
 0x146   : > { %s674_s15 = scalar_lea.sflag [#allocation3], %s673_s14 }
 0x147   : > { %p830_p12 = pnand %p836_p11, %p1135_p9 }
 0x149   : > { %1001 = dma.done.wait (!%p830_p12), %s674_s15, 16  }
 0x14a   : > { %1003 = vsyncadd (!%p830_p12), %s674_s15, 4294967280  ;;  %s682_s22 = scalar_lea.sflag [#allocation5], %s673_s14 }
 0x14b   : > { %1005 = dma.done.wait (!%p830_p12), %s682_s22, 16  }
 0x14c   : > { %1007 = vsyncadd (!%p830_p12), %s682_s22, 4294967280  ;;  %s22_s25 = sadd.s32 1, %s1038_s25   ;;  %s1302_s18 = smov %s1014_s19 }
 0x14d   : > { %p19_p13 = scmp.ge.s32.totalorder %s22_s25, 6   ;;  %s1303_s19 = smov %s1018_s20 }
 0x14e   : > { %s1304_s20 = smov %s1143_s9  ;;  %s1305_s21 = smov %s1030_s23 }
 0x14f   : > { %s1306_s22 = smov %s1034_s24  ;;  %s1307_s23 = smov %s1310_s28 }
 0x150   : > { %s1308_s24 = smov %s1314_s29  ;;  %21 = sbr.rel (!%p19_p13) target bundleno = 7 (0x7), region = 95 }
 0x157   :  { %686 = vsyncpa [#allocation3], 1 }
 0x158   :  { %688 = vsyncpa [#allocation3 + $0x1], 1 }
 0x159   :  { %689 = vsyncpa [#allocation5], 1 }
 0x15a   :  { %691 = vsyncpa [#allocation5 + $0x1], 1 }

</bundles_post_ra>
